<compile_context>
chip_gen: v6e
topology: v6e:2x2x1
jax: 0.10.0
libtpu: 0.0.40
codegen_flags: <defaults>
</compile_context>

<pallas_src>
import math

import jax
import jax.numpy as jnp
from jax.experimental import pallas as pl
from jax.experimental.pallas import tpu as pltpu

_LANE = 128


def _band_kernel(x_ref, w_ref, b_ref, o_ref):
    """Process one lane-dense slab of band frequencies.

    x_ref: (2, B,   Cin,  TF)   [0]=real, [1]=imag
    w_ref: (3, Cin, Cout, TF)   [0]=wr, [1]=wi-wr, [2]=wi+wr
    b_ref: (2, 1,   Cout, TF)
    o_ref: (2, B,   Cout, TF)

    NOTE: all blocks keep the leading / channel dims at full array extent, so
    the (8,128) BlockSpec rule is satisfied via "block == full dim"; do not
    block over B or Cout without keeping full-dim blocks.
    """
    _, B, Cin, TF = x_ref.shape
    Cout = w_ref.shape[2]

    xr = x_ref[0]            # (B, Cin, TF)
    xi = x_ref[1]
    wr = w_ref[0]            # (Cin, Cout, TF)
    wd = w_ref[1]            # wi - wr
    ws = w_ref[2]            # wi + wr

    out_r = None
    out_i = None
    # Unrolled contraction over Cin (tiny trip count).  Every multiply is a
    # full-lane VPU op; broadcasts are implicit (pure vreg reuse, no temps).
    # TODO(synk): if Cin ever grows beyond a handful, switch to
    # lax.fori_loop(..., unroll=True) to bound accumulator live ranges.
    for i in range(Cin):
        xr_i = xr[:, i:i + 1, :]     # (B, 1, TF)   broadcasts over Cout (sublane)
        xi_i = xi[:, i:i + 1, :]
        wr_i = wr[i][None]           # (1, Cout, TF) broadcasts over B
        wd_i = wd[i][None]
        ws_i = ws[i][None]
        # Karatsuba complex product: 3 multiplies per Cin term.
        k1 = wr_i * (xr_i + xi_i)                 # (B, Cout, TF)
        t_r = k1 - xi_i * ws_i                    # wr*xr - wi*xi
        t_i = k1 + xr_i * wd_i                    # wr*xi + wi*xr
        out_r = t_r if out_r is None else out_r + t_r
        out_i = t_i if out_i is None else out_i + t_i

    # Bias broadcasts over the batch axis at store time.
    o_ref[0] = out_r + b_ref[0]
    o_ref[1] = out_i + b_ref[1]


def _num_tensorcores():
    """Best-effort TensorCore count per chip (2 on v7x, 1 on v5e/v6e)."""
    try:
        kind = str(getattr(jax.devices()[0], "device_kind", "")).lower()
        if "v7" in kind:
            return 2
    except Exception:
        pass
    return 1


def _pick_tile_f(F, B, Cin, Cout, num_cores=1):
    """Frequency-tile width along the lane axis (multiple of 128)."""
    if F <= _LANE:
        return F                       # whole band in a single lane slab
    # f32 bytes per frequency column: double-buffered BlockSpec tiles
    # (x, w, bias, out) plus the in-kernel accumulators / temporaries.
    per_f = 4 * (2 * (2 * B * Cin + 3 * Cin * Cout + 2 * Cout + 2 * B * Cout)
                 + 6 * B * Cout)
    budget = 8 * 1024 * 1024           # conservative vs. 32 MiB scoped VMEM
    t = max(_LANE, min(budget // max(per_f, 1), 512))   # 512 clamp: no spills
    t = (t // _LANE) * _LANE           # lane-aligned
    if num_cores >= 2:
        # Split into >=2 tiles so the "parallel" grid axis feeds both TCs.
        t = max(_LANE, min(t, _LANE * pl.cdiv(F, 2 * _LANE)))
    return t


def prepare_band_params(w_r, w_i, b_r, b_i):
    """One-time relayout of the band parameters (hoist out of the forward).

    weight (F, Cin, Cout) -> (3, Cin, Cout, F) planes [wr, wi-wr, wi+wr];
    bias   (F, Cout)      -> (2, 1, Cout, F)   planes [br, bi].
    """
    wr = jnp.transpose(w_r, (1, 2, 0)).astype(jnp.float32)   # (Cin, Cout, F)
    wi = jnp.transpose(w_i, (1, 2, 0)).astype(jnp.float32)
    w2 = jnp.stack([wr, wi - wr, wi + wr], axis=0)            # (3, Cin, Cout, F)
    br = jnp.transpose(b_r, (1, 0))[None].astype(jnp.float32)  # (1, Cout, F)
    bi = jnp.transpose(b_i, (1, 0))[None].astype(jnp.float32)
    b2 = jnp.stack([br, bi], axis=0)                           # (2, 1, Cout, F)
    return w2, b2


def banded_fourier_pallas(x, w_r, w_i, b_r, b_i, *, start, end, length,
                          prepared=None, min_pallas_freqs=_LANE):
    """x: (B, T, Cin) float32. Returns (B, T, Cout) float32."""
    B, T, Cin = x.shape
    F = end - start
    Cout = w_r.shape[-1]
    total_freqs = T // 2 + 1

    # rfft along time (plain JAX / XLA; no Pallas FFT primitive).
    x_fft = jnp.fft.rfft(x.astype(jnp.float32), axis=1)       # (B, total, Cin) c64
    x_band = x_fft[:, start:end, :]                            # (B, F, Cin)

    if F < min_pallas_freqs:
        # Small-band fast path: with F < 128 the kernel's output last dim is
        # below one lane (masked vst, ~F/128 vreg utilization) and the
        # relayout is pure overhead — the XLA einsum is strictly cheaper.
        w = (w_r + 1j * w_i).astype(jnp.complex64)
        bias = (b_r + 1j * b_i).astype(jnp.complex64)
        band = jnp.einsum('bti,tio->bto', x_band, w) + bias[None]   # (B, F, Cout)
    else:
        if prepared is None:
            # NOTE: prefer computing this once per parameter update and
            # passing `prepared=` (avoids a per-call weight relayout).
            prepared = prepare_band_params(w_r, w_i, b_r, b_i)
        w2, b2 = prepared

        # Lane-dense re-layout of the activations: F on the last (lane) axis,
        # real/imag fused on axis 0.
        x2 = jnp.stack([jnp.real(x_band), jnp.imag(x_band)], axis=0)   # (2,B,F,Cin)
        x2 = jnp.transpose(x2, (0, 1, 3, 2)).astype(jnp.float32)       # (2,B,Cin,F)

        tile_f = _pick_tile_f(F, B, Cin, Cout, _num_tensorcores())
        n_tiles = pl.cdiv(F, tile_f)
        f_padded = n_tiles * tile_f
        if f_padded != F:              # zero-pad the lane axis to full tiles
            pad = ((0, 0), (0, 0), (0, 0), (0, f_padded - F))
            x2 = jnp.pad(x2, pad)
            w2 = jnp.pad(w2, pad)
            b2 = jnp.pad(b2, pad)

        out = pl.pallas_call(
            _band_kernel,
            out_shape=jax.ShapeDtypeStruct((2, B, Cout, f_padded), jnp.float32),
            grid=(n_tiles,),
            in_specs=[
                pl.BlockSpec((2, B, Cin, tile_f), lambda f: (0, 0, 0, f)),
                pl.BlockSpec((3, Cin, Cout, tile_f), lambda f: (0, 0, 0, f)),
                pl.BlockSpec((2, 1, Cout, tile_f), lambda f: (0, 0, 0, f)),
            ],
            out_specs=pl.BlockSpec((2, B, Cout, tile_f), lambda f: (0, 0, 0, f)),
            compiler_params=pltpu.CompilerParams(
                dimension_semantics=("parallel",),
                vmem_limit_bytes=32 * 1024 * 1024),
        )(x2, w2, b2)                                          # (2, B, Cout, Fp)

        band = (out[0, :, :, :F] + 1j * out[1, :, :, :F]).astype(jnp.complex64)
        band = jnp.transpose(band, (0, 2, 1))                  # (B, F, Cout)

    out_fft = jnp.zeros((B, total_freqs, Cout), dtype=jnp.complex64)
    out_fft = out_fft.at[:, start:end, :].set(band)

    # irfft back to the time domain (plain JAX).
    return jnp.fft.irfft(out_fft, n=length, axis=1)            # (B, T, Cout)


def init_params(key, in_channels, out_channels, num_freqs):
    """Deterministic synthetic init mirroring the module's parameter shapes.
    weight: (num_freqs, Cin, Cout) complex; bias: (num_freqs, Cout) complex."""
    fan_in = in_channels * out_channels          # torch fan_in for a 3D weight
    bound = 1.0 / math.sqrt(fan_in)
    k1, k2, k3, k4 = jax.random.split(key, 4)
    w_r = jax.random.uniform(k1, (num_freqs, in_channels, out_channels),
                             jnp.float32, -bound, bound)
    w_i = jax.random.uniform(k2, (num_freqs, in_channels, out_channels),
                             jnp.float32, -bound, bound)
    b_r = jax.random.uniform(k3, (num_freqs, out_channels),
                             jnp.float32, -bound, bound)
    b_i = jax.random.uniform(k4, (num_freqs, out_channels),
                             jnp.float32, -bound, bound)
    return w_r, w_i, b_r, b_i


def reference_jax(x, w_r, w_i, b_r, b_i, *, start, end, length):
    """Pure-JAX reference mirroring the PyTorch forward exactly."""
    B, T, _ = x.shape
    Cout = w_r.shape[-1]
    total = T // 2 + 1
    x_fft = jnp.fft.rfft(x.astype(jnp.float32), axis=1)
    w = (w_r + 1j * w_i).astype(jnp.complex64)
    bias = (b_r + 1j * b_i).astype(jnp.complex64)
    band = jnp.einsum('bti,tio->bto', x_fft[:, start:end, :], w) + bias[None]
    out_fft = jnp.zeros((B, total, Cout), dtype=jnp.complex64)
    out_fft = out_fft.at[:, start:end, :].set(band)
    return jnp.fft.irfft(out_fft, n=length, axis=1)


def _run_case(B, in_channels, out_channels, length, num_bands, band, key):
    total_freqs = length // 2 + 1
    num_freqs = total_freqs // num_bands + (
        total_freqs % num_bands if band == num_bands - 1 else 0)
    start = band * (total_freqs // num_bands)
    end = start + num_freqs

    kx, kp = jax.random.split(key)
    x = jax.random.normal(kx, (B, length, in_channels), jnp.float32)
    w_r, w_i, b_r, b_i = init_params(kp, in_channels, out_channels, num_freqs)

    prepared = prepare_band_params(w_r, w_i, b_r, b_i)   # hoisted relayout
    out = banded_fourier_pallas(x, w_r, w_i, b_r, b_i, start=start, end=end,
                                length=length, prepared=prepared)
    out = jax.block_until_ready(out)

    ref = reference_jax(x, w_r, w_i, b_r, b_i, start=start, end=end, length=length)
    assert out.shape == (B, length, out_channels)
    assert jnp.allclose(out, ref, atol=2e-4, rtol=1e-4), "mismatch vs reference"


if __name__ == "__main__":
    key = jax.random.PRNGKey(0)
    k1, k2 = jax.random.split(key)

    # Config A: the module's shipped tiny band (length=16, F=4) -> small-band
    # fast path (XLA einsum; the Pallas kernel would be pure overhead here).
    _run_case(B=2, in_channels=4, out_channels=8,
              length=16, num_bands=2, band=0, key=k1)

    # Config B: a full-lane band (length=254 -> F=128) -> Pallas lane-dense
    # kernel path, single 128-wide tile, unmasked stores.
    _run_case(B=2, in_channels=4, out_channels=8,
              length=254, num_bands=1, band=0, key=k2)

    print("KERNEL_OK")
</pallas_src>

<mosaic_0001>
module attributes {stable_mosaic.version = 11 : i64} {
  func.func @_band_kernel(%arg0: i32, %arg1: memref<2x2x4x128xf32, #tpu.memory_space<vmem>>, %arg2: memref<3x4x8x128xf32, #tpu.memory_space<vmem>>, %arg3: memref<2x1x8x128xf32, #tpu.memory_space<vmem>>, %arg4: memref<2x2x8x128xf32, #tpu.memory_space<vmem>>) attributes {dimension_semantics = [#tpu.dimension_semantics<parallel>], iteration_bounds = array<i64: 1>, scalar_prefetch = 0 : i64, scratch_operands = 0 : i64, tpu.core_type = #tpu.core_type<tc>, window_params = [{transform_indices = @transform_0, window_bounds = array<i64: 2, 2, 4, 128>}, {transform_indices = @transform_1, window_bounds = array<i64: 3, 4, 8, 128>}, {transform_indices = @transform_2, window_bounds = array<i64: 2, 1, 8, 128>}, {transform_indices = @transform_3, window_bounds = array<i64: 2, 2, 8, 128>}]} {
    %c0 = arith.constant 0 : index
    %c0_0 = arith.constant 0 : index
    %c0_1 = arith.constant 0 : index
    %c0_2 = arith.constant 0 : index
    %0 = vector.load %arg1[%c0, %c0_0, %c0_1, %c0_2] : memref<2x2x4x128xf32, #tpu.memory_space<vmem>>, vector<1x2x4x128xf32>
    %1 = vector.shape_cast %0 : vector<1x2x4x128xf32> to vector<2x4x128xf32>
    %c1 = arith.constant 1 : index
    %c0_3 = arith.constant 0 : index
    %c0_4 = arith.constant 0 : index
    %c0_5 = arith.constant 0 : index
    %2 = vector.load %arg1[%c1, %c0_3, %c0_4, %c0_5] : memref<2x2x4x128xf32, #tpu.memory_space<vmem>>, vector<1x2x4x128xf32>
    %3 = vector.shape_cast %2 : vector<1x2x4x128xf32> to vector<2x4x128xf32>
    %c0_6 = arith.constant 0 : index
    %c0_7 = arith.constant 0 : index
    %c0_8 = arith.constant 0 : index
    %c0_9 = arith.constant 0 : index
    %4 = vector.load %arg2[%c0_6, %c0_7, %c0_8, %c0_9] : memref<3x4x8x128xf32, #tpu.memory_space<vmem>>, vector<1x4x8x128xf32>
    %5 = vector.shape_cast %4 : vector<1x4x8x128xf32> to vector<4x8x128xf32>
    %c1_10 = arith.constant 1 : index
    %c0_11 = arith.constant 0 : index
    %c0_12 = arith.constant 0 : index
    %c0_13 = arith.constant 0 : index
    %6 = vector.load %arg2[%c1_10, %c0_11, %c0_12, %c0_13] : memref<3x4x8x128xf32, #tpu.memory_space<vmem>>, vector<1x4x8x128xf32>
    %7 = vector.shape_cast %6 : vector<1x4x8x128xf32> to vector<4x8x128xf32>
    %c2 = arith.constant 2 : index
    %c0_14 = arith.constant 0 : index
    %c0_15 = arith.constant 0 : index
    %c0_16 = arith.constant 0 : index
    %8 = vector.load %arg2[%c2, %c0_14, %c0_15, %c0_16] : memref<3x4x8x128xf32, #tpu.memory_space<vmem>>, vector<1x4x8x128xf32>
    %9 = vector.shape_cast %8 : vector<1x4x8x128xf32> to vector<4x8x128xf32>
    %10 = vector.extract_strided_slice %1 {offsets = [0, 0, 0], sizes = [2, 1, 128], strides = [1, 1, 1]} : vector<2x4x128xf32> to vector<2x1x128xf32>
    %11 = vector.extract_strided_slice %3 {offsets = [0, 0, 0], sizes = [2, 1, 128], strides = [1, 1, 1]} : vector<2x4x128xf32> to vector<2x1x128xf32>
    %12 = vector.extract_strided_slice %5 {offsets = [0, 0, 0], sizes = [1, 8, 128], strides = [1, 1, 1]} : vector<4x8x128xf32> to vector<1x8x128xf32>
    %13 = vector.shape_cast %12 : vector<1x8x128xf32> to vector<8x128xf32>
    %14 = vector.shape_cast %13 : vector<8x128xf32> to vector<1x8x128xf32>
    %15 = vector.extract_strided_slice %7 {offsets = [0, 0, 0], sizes = [1, 8, 128], strides = [1, 1, 1]} : vector<4x8x128xf32> to vector<1x8x128xf32>
    %16 = vector.shape_cast %15 : vector<1x8x128xf32> to vector<8x128xf32>
    %17 = vector.shape_cast %16 : vector<8x128xf32> to vector<1x8x128xf32>
    %18 = vector.extract_strided_slice %9 {offsets = [0, 0, 0], sizes = [1, 8, 128], strides = [1, 1, 1]} : vector<4x8x128xf32> to vector<1x8x128xf32>
    %19 = vector.shape_cast %18 : vector<1x8x128xf32> to vector<8x128xf32>
    %20 = vector.shape_cast %19 : vector<8x128xf32> to vector<1x8x128xf32>
    %21 = arith.addf %10, %11 : vector<2x1x128xf32>
    %22 = vector.broadcast %14 : vector<1x8x128xf32> to vector<2x8x128xf32>
    %23 = vector.broadcast %21 : vector<2x1x128xf32> to vector<2x8x128xf32>
    %24 = arith.mulf %22, %23 : vector<2x8x128xf32>
    %25 = vector.broadcast %11 : vector<2x1x128xf32> to vector<2x8x128xf32>
    %26 = vector.broadcast %20 : vector<1x8x128xf32> to vector<2x8x128xf32>
    %27 = arith.mulf %25, %26 : vector<2x8x128xf32>
    %28 = arith.subf %24, %27 : vector<2x8x128xf32>
    %29 = vector.broadcast %10 : vector<2x1x128xf32> to vector<2x8x128xf32>
    %30 = vector.broadcast %17 : vector<1x8x128xf32> to vector<2x8x128xf32>
    %31 = arith.mulf %29, %30 : vector<2x8x128xf32>
    %32 = arith.addf %24, %31 : vector<2x8x128xf32>
    %33 = vector.extract_strided_slice %1 {offsets = [0, 1, 0], sizes = [2, 1, 128], strides = [1, 1, 1]} : vector<2x4x128xf32> to vector<2x1x128xf32>
    %34 = vector.extract_strided_slice %3 {offsets = [0, 1, 0], sizes = [2, 1, 128], strides = [1, 1, 1]} : vector<2x4x128xf32> to vector<2x1x128xf32>
    %35 = vector.extract_strided_slice %5 {offsets = [1, 0, 0], sizes = [1, 8, 128], strides = [1, 1, 1]} : vector<4x8x128xf32> to vector<1x8x128xf32>
    %36 = vector.shape_cast %35 : vector<1x8x128xf32> to vector<8x128xf32>
    %37 = vector.shape_cast %36 : vector<8x128xf32> to vector<1x8x128xf32>
    %38 = vector.extract_strided_slice %7 {offsets = [1, 0, 0], sizes = [1, 8, 128], strides = [1, 1, 1]} : vector<4x8x128xf32> to vector<1x8x128xf32>
    %39 = vector.shape_cast %38 : vector<1x8x128xf32> to vector<8x128xf32>
    %40 = vector.shape_cast %39 : vector<8x128xf32> to vector<1x8x128xf32>
    %41 = vector.extract_strided_slice %9 {offsets = [1, 0, 0], sizes = [1, 8, 128], strides = [1, 1, 1]} : vector<4x8x128xf32> to vector<1x8x128xf32>
    %42 = vector.shape_cast %41 : vector<1x8x128xf32> to vector<8x128xf32>
    %43 = vector.shape_cast %42 : vector<8x128xf32> to vector<1x8x128xf32>
    %44 = arith.addf %33, %34 : vector<2x1x128xf32>
    %45 = vector.broadcast %37 : vector<1x8x128xf32> to vector<2x8x128xf32>
    %46 = vector.broadcast %44 : vector<2x1x128xf32> to vector<2x8x128xf32>
    %47 = arith.mulf %45, %46 : vector<2x8x128xf32>
    %48 = vector.broadcast %34 : vector<2x1x128xf32> to vector<2x8x128xf32>
    %49 = vector.broadcast %43 : vector<1x8x128xf32> to vector<2x8x128xf32>
    %50 = arith.mulf %48, %49 : vector<2x8x128xf32>
    %51 = arith.subf %47, %50 : vector<2x8x128xf32>
    %52 = vector.broadcast %33 : vector<2x1x128xf32> to vector<2x8x128xf32>
    %53 = vector.broadcast %40 : vector<1x8x128xf32> to vector<2x8x128xf32>
    %54 = arith.mulf %52, %53 : vector<2x8x128xf32>
    %55 = arith.addf %47, %54 : vector<2x8x128xf32>
    %56 = arith.addf %28, %51 : vector<2x8x128xf32>
    %57 = arith.addf %32, %55 : vector<2x8x128xf32>
    %58 = vector.extract_strided_slice %1 {offsets = [0, 2, 0], sizes = [2, 1, 128], strides = [1, 1, 1]} : vector<2x4x128xf32> to vector<2x1x128xf32>
    %59 = vector.extract_strided_slice %3 {offsets = [0, 2, 0], sizes = [2, 1, 128], strides = [1, 1, 1]} : vector<2x4x128xf32> to vector<2x1x128xf32>
    %60 = vector.extract_strided_slice %5 {offsets = [2, 0, 0], sizes = [1, 8, 128], strides = [1, 1, 1]} : vector<4x8x128xf32> to vector<1x8x128xf32>
    %61 = vector.shape_cast %60 : vector<1x8x128xf32> to vector<8x128xf32>
    %62 = vector.shape_cast %61 : vector<8x128xf32> to vector<1x8x128xf32>
    %63 = vector.extract_strided_slice %7 {offsets = [2, 0, 0], sizes = [1, 8, 128], strides = [1, 1, 1]} : vector<4x8x128xf32> to vector<1x8x128xf32>
    %64 = vector.shape_cast %63 : vector<1x8x128xf32> to vector<8x128xf32>
    %65 = vector.shape_cast %64 : vector<8x128xf32> to vector<1x8x128xf32>
    %66 = vector.extract_strided_slice %9 {offsets = [2, 0, 0], sizes = [1, 8, 128], strides = [1, 1, 1]} : vector<4x8x128xf32> to vector<1x8x128xf32>
    %67 = vector.shape_cast %66 : vector<1x8x128xf32> to vector<8x128xf32>
    %68 = vector.shape_cast %67 : vector<8x128xf32> to vector<1x8x128xf32>
    %69 = arith.addf %58, %59 : vector<2x1x128xf32>
    %70 = vector.broadcast %62 : vector<1x8x128xf32> to vector<2x8x128xf32>
    %71 = vector.broadcast %69 : vector<2x1x128xf32> to vector<2x8x128xf32>
    %72 = arith.mulf %70, %71 : vector<2x8x128xf32>
    %73 = vector.broadcast %59 : vector<2x1x128xf32> to vector<2x8x128xf32>
    %74 = vector.broadcast %68 : vector<1x8x128xf32> to vector<2x8x128xf32>
    %75 = arith.mulf %73, %74 : vector<2x8x128xf32>
    %76 = arith.subf %72, %75 : vector<2x8x128xf32>
    %77 = vector.broadcast %58 : vector<2x1x128xf32> to vector<2x8x128xf32>
    %78 = vector.broadcast %65 : vector<1x8x128xf32> to vector<2x8x128xf32>
    %79 = arith.mulf %77, %78 : vector<2x8x128xf32>
    %80 = arith.addf %72, %79 : vector<2x8x128xf32>
    %81 = arith.addf %56, %76 : vector<2x8x128xf32>
    %82 = arith.addf %57, %80 : vector<2x8x128xf32>
    %83 = vector.extract_strided_slice %1 {offsets = [0, 3, 0], sizes = [2, 1, 128], strides = [1, 1, 1]} : vector<2x4x128xf32> to vector<2x1x128xf32>
    %84 = vector.extract_strided_slice %3 {offsets = [0, 3, 0], sizes = [2, 1, 128], strides = [1, 1, 1]} : vector<2x4x128xf32> to vector<2x1x128xf32>
    %85 = vector.extract_strided_slice %5 {offsets = [3, 0, 0], sizes = [1, 8, 128], strides = [1, 1, 1]} : vector<4x8x128xf32> to vector<1x8x128xf32>
    %86 = vector.shape_cast %85 : vector<1x8x128xf32> to vector<8x128xf32>
    %87 = vector.shape_cast %86 : vector<8x128xf32> to vector<1x8x128xf32>
    %88 = vector.extract_strided_slice %7 {offsets = [3, 0, 0], sizes = [1, 8, 128], strides = [1, 1, 1]} : vector<4x8x128xf32> to vector<1x8x128xf32>
    %89 = vector.shape_cast %88 : vector<1x8x128xf32> to vector<8x128xf32>
    %90 = vector.shape_cast %89 : vector<8x128xf32> to vector<1x8x128xf32>
    %91 = vector.extract_strided_slice %9 {offsets = [3, 0, 0], sizes = [1, 8, 128], strides = [1, 1, 1]} : vector<4x8x128xf32> to vector<1x8x128xf32>
    %92 = vector.shape_cast %91 : vector<1x8x128xf32> to vector<8x128xf32>
    %93 = vector.shape_cast %92 : vector<8x128xf32> to vector<1x8x128xf32>
    %94 = arith.addf %83, %84 : vector<2x1x128xf32>
    %95 = vector.broadcast %87 : vector<1x8x128xf32> to vector<2x8x128xf32>
    %96 = vector.broadcast %94 : vector<2x1x128xf32> to vector<2x8x128xf32>
    %97 = arith.mulf %95, %96 : vector<2x8x128xf32>
    %98 = vector.broadcast %84 : vector<2x1x128xf32> to vector<2x8x128xf32>
    %99 = vector.broadcast %93 : vector<1x8x128xf32> to vector<2x8x128xf32>
    %100 = arith.mulf %98, %99 : vector<2x8x128xf32>
    %101 = arith.subf %97, %100 : vector<2x8x128xf32>
    %102 = vector.broadcast %83 : vector<2x1x128xf32> to vector<2x8x128xf32>
    %103 = vector.broadcast %90 : vector<1x8x128xf32> to vector<2x8x128xf32>
    %104 = arith.mulf %102, %103 : vector<2x8x128xf32>
    %105 = arith.addf %97, %104 : vector<2x8x128xf32>
    %106 = arith.addf %81, %101 : vector<2x8x128xf32>
    %107 = arith.addf %82, %105 : vector<2x8x128xf32>
    %c0_17 = arith.constant 0 : index
    %c0_18 = arith.constant 0 : index
    %c0_19 = arith.constant 0 : index
    %c0_20 = arith.constant 0 : index
    %108 = vector.load %arg3[%c0_17, %c0_18, %c0_19, %c0_20] : memref<2x1x8x128xf32, #tpu.memory_space<vmem>>, vector<1x1x8x128xf32>
    %109 = vector.shape_cast %108 : vector<1x1x8x128xf32> to vector<1x8x128xf32>
    %110 = vector.broadcast %109 : vector<1x8x128xf32> to vector<2x8x128xf32>
    %111 = arith.addf %106, %110 : vector<2x8x128xf32>
    %c0_21 = arith.constant 0 : index
    %c0_22 = arith.constant 0 : index
    %c0_23 = arith.constant 0 : index
    %c0_24 = arith.constant 0 : index
    %112 = vector.load %arg4[%c0_21, %c0_22, %c0_23, %c0_24] : memref<2x2x8x128xf32, #tpu.memory_space<vmem>>, vector<1x2x8x128xf32>
    %113 = vector.shape_cast %112 : vector<1x2x8x128xf32> to vector<2x8x128xf32>
    %114 = vector.shape_cast %111 : vector<2x8x128xf32> to vector<1x2x8x128xf32>
    tpu.vector_store %arg4[%c0_21, %c0_22, %c0_23, %c0_24], %114 {strides = array<i32>} : memref<2x2x8x128xf32, #tpu.memory_space<vmem>>, vector<1x2x8x128xf32>,
    %c1_25 = arith.constant 1 : index
    %c0_26 = arith.constant 0 : index
    %c0_27 = arith.constant 0 : index
    %c0_28 = arith.constant 0 : index
    %115 = vector.load %arg3[%c1_25, %c0_26, %c0_27, %c0_28] : memref<2x1x8x128xf32, #tpu.memory_space<vmem>>, vector<1x1x8x128xf32>
    %116 = vector.shape_cast %115 : vector<1x1x8x128xf32> to vector<1x8x128xf32>
    %117 = vector.broadcast %116 : vector<1x8x128xf32> to vector<2x8x128xf32>
    %118 = arith.addf %107, %117 : vector<2x8x128xf32>
    %c1_29 = arith.constant 1 : index
    %c0_30 = arith.constant 0 : index
    %c0_31 = arith.constant 0 : index
    %c0_32 = arith.constant 0 : index
    %119 = vector.load %arg4[%c1_29, %c0_30, %c0_31, %c0_32] : memref<2x2x8x128xf32, #tpu.memory_space<vmem>>, vector<1x2x8x128xf32>
    %120 = vector.shape_cast %119 : vector<1x2x8x128xf32> to vector<2x8x128xf32>
    %121 = vector.shape_cast %118 : vector<2x8x128xf32> to vector<1x2x8x128xf32>
    tpu.vector_store %arg4[%c1_29, %c0_30, %c0_31, %c0_32], %121 {strides = array<i32>} : memref<2x2x8x128xf32, #tpu.memory_space<vmem>>, vector<1x2x8x128xf32>,
    return
  }
  func.func @transform_0(%arg0: i32) -> (i32, i32, i32, i32) {
    %c0_i32 = arith.constant 0 : i32
    %c0_i32_0 = arith.constant 0 : i32
    %c0_i32_1 = arith.constant 0 : i32
    %c0_i32_2 = arith.constant 0 : i32
    return %c0_i32, %c0_i32_0, %c0_i32_1, %arg0 : i32, i32, i32, i32
  }
  func.func @transform_1(%arg0: i32) -> (i32, i32, i32, i32) {
    %c0_i32 = arith.constant 0 : i32
    %c0_i32_0 = arith.constant 0 : i32
    %c0_i32_1 = arith.constant 0 : i32
    %c0_i32_2 = arith.constant 0 : i32
    return %c0_i32, %c0_i32_0, %c0_i32_1, %arg0 : i32, i32, i32, i32
  }
  func.func @transform_2(%arg0: i32) -> (i32, i32, i32, i32) {
    %c0_i32 = arith.constant 0 : i32
    %c0_i32_0 = arith.constant 0 : i32
    %c0_i32_1 = arith.constant 0 : i32
    %c0_i32_2 = arith.constant 0 : i32
    return %c0_i32, %c0_i32_0, %c0_i32_1, %arg0 : i32, i32, i32, i32
  }
  func.func @transform_3(%arg0: i32) -> (i32, i32, i32, i32) {
    %c0_i32 = arith.constant 0 : i32
    %c0_i32_0 = arith.constant 0 : i32
    %c0_i32_1 = arith.constant 0 : i32
    %c0_i32_2 = arith.constant 0 : i32
    return %c0_i32, %c0_i32_0, %c0_i32_1, %arg0 : i32, i32, i32, i32
  }
}

</mosaic_0001>

<bundles_post_ra>
// kernel: tpu_custom_call.1
= control target key start
LH: loop header
LB: loop body
LE: loop exit
PB: predicated region body
PF: predicated region fallthrough
CT: control target
= control target key end

     0   :  { %8 = vsyncpa [#allocation3], 0  ;;  %s444_s0 = inlined_call_operand.hbm [shape: f32[2,2,4,128], index: 0, kind: input, shape index: {}]   ;;  %s445_s1 = inlined_call_operand.hbm [shape: f32[3,4,8,128], index: 1, kind: input, shape index: {}]   ;;  %s446_s2 = inlined_call_operand.hbm [shape: f32[2,1,8,128], index: 2, kind: input, shape index: {}]   ;;  %s447_s3 = inlined_call_operand.hbm [shape: f32[2,2,8,128], index: 3, kind: output, shape index: {}]  }
   0x1   :  { %9 = vsyncpa [#allocation6], 0 }
   0x2   :  { %10 = vsyncpa [#allocation4], 0  ;;  %s349_s12 = smov [#allocation5]  }
   0x3   :  { %s28_s13 = sshll.u32 %s349_s12, 4  ;;  %s29_s13 = int_to_ptr.vmem [resolvable:$true] %s28_s13 }
   0x4   :  { %s271_s14 = scalar_lea.vmem %s29_s13, 1536  ;;  %p276_p1 = scmp.lt.s32.totalorder %s29_s13, %s29_s13 }
   0x5   :  { %p272_p0 = scmp.ne.s32.totalorder %s29_s13, %s271_s14  ;;  %p277_p2 = scmp.lt.s32.totalorder %s271_s14, %s271_s14 }
   0x7   :  { %p278_p3 = por %p277_p2, %p276_p1 }
   0x9   :  { %p279_p4 = pnand %p278_p3, %p272_p0 }
   0xb   :  { %282 = shalt.err (!%p279_p4)
}
   0xc   :  { %s350_s15 = smov 128   ;;  %s351_s16 = smov 8  }
   0xd   :  { %34 = dma.hbm_to_vmem [thread:$0]  %s445_s1, 1536, %s29_s13, [#allocation6], %s350_s15, %s350_s15, %s351_s16  }
   0xe   :  { %s352_s19 = smov [#allocation2]  }
   0xf   :  { %s16_s20 = sshll.u32 %s352_s19, 4  ;;  %s17_s20 = int_to_ptr.vmem [resolvable:$true] %s16_s20 }
  0x10   :  { %s291_s21 = scalar_lea.vmem %s17_s20, 256  ;;  %p296_p6 = scmp.lt.s32.totalorder %s17_s20, %s17_s20 }
  0x11   :  { %p292_p5 = scmp.ne.s32.totalorder %s17_s20, %s291_s21  ;;  %p297_p7 = scmp.lt.s32.totalorder %s291_s21, %s291_s21 }
  0x13   :  { %p298_p8 = por %p297_p7, %p296_p6 }
  0x15   :  { %p299_p9 = pnand %p298_p8, %p292_p5 }
  0x17   :  { %302 = shalt.err (!%p299_p9)
}
  0x18   :  { %s353_s22 = smov 64   ;;  %s354_s23 = smov 4  }
  0x19   :  { %22 = dma.hbm_to_vmem [thread:$0]  %s444_s0, 256, %s17_s20, [#allocation3], %s353_s22, %s353_s22, %s354_s23  }
  0x1a   :  { %s355_s26 = smov [#allocation7]  }
  0x1b   :  { %s40_s27 = sshll.u32 %s355_s26, 4  ;;  %s41_s27 = int_to_ptr.vmem [resolvable:$true] %s40_s27 }
  0x1c   :  { %s311_s1 = scalar_lea.vmem %s41_s27, 256  ;;  %p316_p11 = scmp.lt.s32.totalorder %s41_s27, %s41_s27 }
  0x1d   :  { %p312_p10 = scmp.ne.s32.totalorder %s41_s27, %s311_s1  ;;  %p317_p12 = scmp.lt.s32.totalorder %s311_s1, %s311_s1 }
  0x1f   :  { %p318_p13 = por %p317_p12, %p316_p11 }
  0x21   :  { %p319_p0 = pnand %p318_p13, %p312_p10 }
  0x23   :  { %322 = shalt.err (!%p319_p0)
}
  0x24   :  { %46 = dma.hbm_to_vmem [thread:$0]  %s446_s2, 256, %s41_s27, [#allocation6], %s350_s15, %s350_s15, %s351_s16  }
  0x25   :  { %343 = dma.done.wait [#allocation3], 256  }
  0x26   :  { %344 = vsyncadd [#allocation3], 4294967040 }
  0x27   :  { %345 = dma.done.wait [#allocation6], 1792  }
  0x28   :  { %346 = vsyncadd [#allocation6], 4294965504  ;;  %v77_v0 = vlaneseq  ;;  %v400_v6 = vld [vmem:[#allocation2] sm:$0xf]  ;;  %v59_v7 = vld [vmem:[#allocation2 + $0x8] sm:$0xf] }
  0x29   :  { %v61_v8 = vld [vmem:[#allocation5] sm:$0xff]  ;;  %v62_v9 = vld [vmem:[#allocation5 + $0x8] sm:$0xff]  ;;  %v63_v10 = vld [vmem:[#allocation5 + $0x10] sm:$0xff]  ;;  %v75_v11 = vadd.f32 %v59_v7, %v400_v6  ;;  %s356_s0 = smov [#allocation8]  }
  0x2a   :  { %v78_v1 = vshrl.u32 %v77_v0, 7  ;;  %v71_v15 = vld [vmem:[#allocation5 + $0x40] sm:$0xff]  ;;  %v72_v16 = vld [vmem:[#allocation5 + $0x48] sm:$0xff]  ;;  %v73_v17 = vld [vmem:[#allocation5 + $0x50] sm:$0xff]  ;;  %s242_s2 = sshll.u32 %s356_s0, 4  ;;  %s243_s2 = int_to_ptr.vmem [resolvable:$true] %s242_s2 }
  0x2b   :  { %v64_v22 = vld [vmem:[#allocation5 + $0x18] sm:$0xff]  ;;  %v415_v28 = vld [vmem:[#allocation2 + $0x4] sm:$0xf]  ;;  %v66_v46 = vld [vmem:[#allocation5 + $0x20] sm:$0xff]  ;;  %s323_s30 = scalar_lea.vmem %s243_s2, 512  ;;  %p328_p2 = scmp.lt.s32.totalorder %s243_s2, %s243_s2 }
  0x2c   :  { %v392_v2 = vsub.s32 0, %v78_v1  ;;  %v394_v3 = vsub.s32 1, %v78_v1  ;;  %v396_v4 = vsub.s32 2, %v78_v1  ;;  %v398_v5 = vsub.s32 3, %v78_v1  ;;  %v74_v23 = vld [vmem:[#allocation5 + $0x58] sm:$0xff]  ;;  %v67_v51 = vld [vmem:[#allocation5 + $0x28] sm:$0xff]  ;;  %p324_p1 = scmp.ne.s32.totalorder %s243_s2, %s323_s30  ;;  %p329_p3 = scmp.lt.s32.totalorder %s323_s30, %s323_s30 }
  0x2d   :  { %v60_v33 = vld [vmem:[#allocation2 + $0xc] sm:$0xf]  ;;  %v68_v59 = vld [vmem:[#allocation5 + $0x30] sm:$0xff]  ;;  %v225_v1 = vld [vmem:[#allocation7] sm:$0xff] }
  0x2e   :  { %v90_v12 = vrot.slane %v59_v7, %v392_v2  ;;  %v124_v13 = vrot.slane %v59_v7, %v394_v3  ;;  %v162_v14 = vrot.slane %v59_v7, %v396_v4  ;;  %v200_v18 = vrot.slane %v59_v7, %v398_v5  ;;  %p330_p4 = por %p329_p3, %p328_p2 }
  0x2f   :  { %v102_v19 = vrot.slane %v400_v6, %v392_v2  ;;  %v136_v20 = vrot.slane %v400_v6, %v394_v3  ;;  %v174_v21 = vrot.slane %v400_v6, %v396_v4  ;;  %v80_v24 = vrot.slane %v75_v11, %v392_v2 }
  0x30   :  { %v95_v25 = vmul.f32 %v90_v12, %v71_v15  ;;  %v114_v26 = vrot.slane %v75_v11, %v394_v3  ;;  %v129_v27 = vmul.f32 %v124_v13, %v72_v16  ;;  %v152_v29 = vrot.slane %v75_v11, %v396_v4  ;;  %p331_p5 = pnand %p330_p4, %p324_p1 }
  0x31   :  { %v167_v30 = vmul.f32 %v162_v14, %v73_v17  ;;  %v190_v31 = vrot.slane %v75_v11, %v398_v5  ;;  %v205_v32 = vmul.f32 %v200_v18, %v74_v23  ;;  %v85_v34 = vmul.f32 %v80_v24, %v61_v8 }
  0x32   :  { %v119_v35 = vmul.f32 %v114_v26, %v62_v9  ;;  %v76_v36 = vadd.f32 %v60_v33, %v415_v28  ;;  %v94_v37 = vrot.slane %v60_v33, %v392_v2  ;;  %v157_v38 = vmul.f32 %v152_v29, %v63_v10 }
  0x33   :  { %v195_v39 = vmul.f32 %v190_v31, %v64_v22  ;;  %v128_v40 = vrot.slane %v60_v33, %v394_v3  ;;  %v166_v41 = vrot.slane %v60_v33, %v396_v4  ;;  %v97_v42 = vsub.f32 %v85_v34, %v95_v25 }
  0x34   :  { %v131_v43 = vsub.f32 %v119_v35, %v129_v27  ;;  %v84_v44 = vrot.slane %v76_v36, %v392_v2  ;;  %v96_v45 = vmul.f32 %v94_v37, %v71_v15  ;;  %v169_v47 = vsub.f32 %v157_v38, %v167_v30  ;;  %v69_v15 = vld [vmem:[#allocation5 + $0x38] sm:$0xff] }
  0x35   :  { %v207_v48 = vsub.f32 %v195_v39, %v205_v32  ;;  %v118_v49 = vrot.slane %v76_v36, %v394_v3  ;;  %v130_v50 = vmul.f32 %v128_v40, %v72_v16  ;;  %v156_v54 = vrot.slane %v76_v36, %v396_v4 }
  0x36   :  { %v145_v52 = vadd.f32 %v131_v43, %v97_v42  ;;  %v86_v53 = vmul.f32 %v84_v44, %v61_v8  ;;  %v168_v55 = vmul.f32 %v166_v41, %v73_v17  ;;  %v194_v57 = vrot.slane %v76_v36, %v398_v5 }
  0x37   :  { %v120_v56 = vmul.f32 %v118_v49, %v62_v9  ;;  %v204_v58 = vrot.slane %v60_v33, %v398_v5  ;;  %v107_v60 = vmul.f32 %v102_v19, %v66_v46  ;;  %v158_v63 = vmul.f32 %v156_v54, %v63_v10 }
  0x38   :  { %v183_v61 = vadd.f32 %v169_v47, %v145_v52  ;;  %v98_v62 = vsub.f32 %v86_v53, %v96_v45  ;;  %v141_v0 = vmul.f32 %v136_v20, %v67_v51  ;;  %v196_v11 = vmul.f32 %v194_v57, %v64_v22 }
  0x39   :  { %v132_v7 = vsub.f32 %v120_v56, %v130_v50  ;;  %v206_v12 = vmul.f32 %v204_v58, %v74_v23  ;;  %v109_v13 = vadd.f32 %v107_v60, %v85_v34  ;;  %v170_v14 = vsub.f32 %v158_v63, %v168_v55  ;;  %v231_v34 = vld [vmem:[#allocation7 + $0x8] sm:$0xff] }
  0x3a   :  { %v221_v8 = vadd.f32 %v207_v48, %v183_v61  ;;  %v143_v16 = vadd.f32 %v141_v0, %v119_v35  ;;  %v179_v9 = vmul.f32 %v174_v21, %v68_v59  ;;  %v212_v24 = vrot.slane %v400_v6, %v398_v5 }
  0x3b   :  { %v146_v17 = vadd.f32 %v132_v7, %v98_v62  ;;  %v208_v18 = vsub.f32 %v196_v11, %v206_v12  ;;  %v106_v19 = vrot.slane %v415_v28, %v392_v2  ;;  %v140_v22 = vrot.slane %v415_v28, %v394_v3 }
  0x3c   :  { %v226_v10 = vadd.f32 %v225_v1, %v221_v8  ;;  %v147_v20 = vadd.f32 %v143_v16, %v109_v13  ;;  %v181_v25 = vadd.f32 %v179_v9, %v157_v38  ;;  %v217_v26 = vmul.f32 %v212_v24, %v69_v15 }
  0x3d   :  { %v184_v23 = vadd.f32 %v170_v14, %v146_v17  ;;  %v108_v27 = vmul.f32 %v106_v19, %v66_v46  ;;  %v178_v21 = vrot.slane %v415_v28, %v396_v4  ;;  %v142_v30 = vmul.f32 %v140_v22, %v67_v51 }
  0x3e   :  { %228 = vst [vmem:[#allocation8] sm:$0xff] %v226_v10  ;;  %v185_v29 = vadd.f32 %v181_v25, %v147_v20  ;;  %v216_v6 = vrot.slane %v415_v28, %v398_v5  ;;  %v219_v2 = vadd.f32 %v217_v26, %v195_v39 }
  0x3f   :  { %v222_v31 = vadd.f32 %v208_v18, %v184_v23  ;;  %v110_v32 = vadd.f32 %v108_v27, %v86_v53  ;;  %v180_v33 = vmul.f32 %v178_v21, %v68_v59  ;;  %v144_v35 = vadd.f32 %v142_v30, %v120_v56 }
  0x40   :  { %v218_v36 = vmul.f32 %v216_v6, %v69_v15  ;;  %v223_v37 = vadd.f32 %v219_v2, %v185_v29 }
  0x41   :  { %v227_v3 = vadd.f32 %v225_v1, %v222_v31  ;;  %v182_v38 = vadd.f32 %v180_v33, %v158_v63  ;;  %v148_v40 = vadd.f32 %v144_v35, %v110_v32 }
  0x42   :  { %v220_v41 = vadd.f32 %v218_v36, %v196_v11  ;;  %v232_v4 = vadd.f32 %v231_v34, %v223_v37 }
  0x43   :  { %229 = vst [vmem:[#allocation8 + $0x8] sm:$0xff] %v227_v3  ;;  %v186_v42 = vadd.f32 %v182_v38, %v148_v40 }
  0x44   :  { %235 = vst [vmem:[#allocation8 + $0x10] sm:$0xff] %v232_v4 }
  0x45   :  { %v224_v43 = vadd.f32 %v220_v41, %v186_v42 }
  0x47   :  { %v233_v5 = vadd.f32 %v231_v34, %v224_v43 }
  0x49   :  { %236 = vst [vmem:[#allocation8 + $0x18] sm:$0xff] %v233_v5 }
  0x4a   :  { %334 = shalt.err (!%p331_p5)
}
  0x4b   :  { %248 = dma.vmem_to_hbm [thread:$0]  %s243_s2, 512, %s447_s3, [#allocation4], %s350_s15, %s350_s15, %s351_s16  }
  0x4c   :  { %347 = dma.done.wait [#allocation4], 512  }
  0x4d   :  { %348 = vsyncadd [#allocation4], 4294966784 }
  0x4e   :  { %252 = vsyncpa [#allocation3], 1 }
  0x4f   :  { %253 = vsyncpa [#allocation6], 1 }
  0x50   :  { %254 = vsyncpa [#allocation4], 1 }

</bundles_post_ra>
